<compile_context>
chip_gen: v5e
topology: v5e:2x2
jax: 0.10.0
libtpu: 0.0.40
codegen_flags: <defaults>
</compile_context>

<pallas_src>
import functools

import jax
import jax.numpy as jnp
from jax.experimental import pallas as pl
from jax.experimental.pallas import tpu as pltpu


# Softshrink(lam)(x) = x - lam if x > lam ; x + lam if x < -lam ; 0 otherwise
#                    = x - clip(x, -lam, lam)
def _soft_thresh_const_kernel(x_ref, o_ref, *, lam):
    x = x_ref[...]
    o_ref[...] = x - jnp.clip(x, -lam, lam)


def _soft_thresh_rowlam_kernel(x_ref, lam_ref, o_ref):
    x = x_ref[...]
    lam = lam_ref[...]  # (TM, 1), broadcast across lanes
    o_ref[...] = x - jnp.clip(x, -lam, lam)


def _tile_sizes(M, HW, max_tm=256, max_thw=2048):
    # Row tile: multiple of 8 sublanes, or the full extent for tiny M.
    tm = M if M < 8 else min(max_tm, (M // 8) * 8)
    # Lane tile: multiple of 128 lanes (lane-dense stores), or full extent.
    thw = HW if HW < 128 else min(max_thw, (HW // 128) * 128)
    return tm, thw


@functools.partial(jax.jit, static_argnames=("lams", "n_list"))
def _soft_thresh_forward_impl(x, lams, n_list):
    N, C, H, W = x.shape
    M, HW = N * C, H * W
    x2 = x.reshape(M, HW)

    TM, THW = _tile_sizes(M, HW)
    grid = (pl.cdiv(M, TM), pl.cdiv(HW, THW))

    x_spec = pl.BlockSpec((TM, THW), lambda i, j: (i, j))
    out_spec = pl.BlockSpec((TM, THW), lambda i, j: (i, j))
    out_shape = jax.ShapeDtypeStruct((M, HW), x.dtype)
    cparams = pltpu.CompilerParams(
        dimension_semantics=("parallel", "parallel")
    )

    if len(lams) == 1:
        # Constant lambda baked into the kernel: no extra input / DMA.
        kernel = functools.partial(
            _soft_thresh_const_kernel, lam=float(lams[0])
        )
        out2 = pl.pallas_call(
            kernel,
            out_shape=out_shape,
            grid_spec=pltpu.PrefetchScalarGridSpec(
                num_scalar_prefetch=0,
                grid=grid,
                in_specs=[x_spec],
                out_specs=out_spec,
            ),
            compiler_params=cparams,
        )(x2)
    else:
        assert sum(n_list) == C, "n_list must cover the channel dimension"
        lam_c = jnp.concatenate(
            [jnp.full((n,), lam, dtype=x.dtype) for lam, n in zip(lams, n_list)]
        )
        lam2 = jnp.tile(lam_c, (N,)).reshape(M, 1)
        out2 = pl.pallas_call(
            _soft_thresh_rowlam_kernel,
            out_shape=out_shape,
            grid_spec=pltpu.PrefetchScalarGridSpec(
                num_scalar_prefetch=0,
                grid=grid,
                in_specs=[
                    x_spec,
                    pl.BlockSpec((TM, 1), lambda i, j: (i, 0)),
                ],
                out_specs=out_spec,
            ),
            compiler_params=cparams,
        )(x2, lam2)

    return out2.reshape(N, C, H, W)


def soft_thresh_forward(x, lams, n_list=()):
    """x: (N, C, H, W). lams: float or sequence of floats. n_list: group sizes."""
    if isinstance(lams, (float, int)):
        lams = (float(lams),)
    else:
        lams = tuple(float(l) for l in lams)
    n_list = tuple(int(n) for n in n_list)
    return _soft_thresh_forward_impl(x, lams, n_list)


def _softshrink_ref(x, lam):
    return jnp.where(x > lam, x - lam, jnp.where(x < -lam, x + lam, 0.0))


if __name__ == "__main__":
    key = jax.random.PRNGKey(0)
    N, C, H, W = 2, 4, 16, 16
    x = jax.random.normal(key, (N, C, H, W), dtype=jnp.float32)

    # Case 1: single float lambda (like soft_thresh(0.3))
    out1 = jax.block_until_ready(soft_thresh_forward(x, 0.3))
    ref1 = _softshrink_ref(x, 0.3)
    assert jnp.allclose(out1, ref1, atol=1e-6), "single-lambda mismatch"

    # Case 2: list of lambdas with n_list (like soft_thresh([0.1, 0.5], n_list=[2, 2]))
    out2 = jax.block_until_ready(
        soft_thresh_forward(x, [0.1, 0.5], n_list=[2, 2])
    )
    ref2 = jnp.concatenate(
        [_softshrink_ref(x[:, 0:2], 0.1), _softshrink_ref(x[:, 2:4], 0.5)],
        axis=1,
    )
    assert jnp.allclose(out2, ref2, atol=1e-6), "multi-lambda mismatch"

    print("KERNEL_OK")
</pallas_src>

<mosaic_0001>
module attributes {stable_mosaic.version = 11 : i64} {
  func.func @_soft_thresh_const_kernel(%arg0: i32, %arg1: i32, %arg2: memref<8x256xf32, #tpu.memory_space<vmem>>, %arg3: memref<8x256xf32, #tpu.memory_space<vmem>>) attributes {dimension_semantics = [#tpu.dimension_semantics<parallel>, #tpu.dimension_semantics<parallel>], iteration_bounds = array<i64: 1, 1>, scalar_prefetch = 0 : i64, scratch_operands = 0 : i64, tpu.core_type = #tpu.core_type<tc>, window_params = [{transform_indices = @transform_0, window_bounds = array<i64: 8, 256>}, {transform_indices = @transform_1, window_bounds = array<i64: 8, 256>}]} {
    %c0 = arith.constant 0 : index
    %c0_0 = arith.constant 0 : index
    %0 = vector.load %arg2[%c0, %c0_0] : memref<8x256xf32, #tpu.memory_space<vmem>>, vector<8x256xf32>
    %cst = arith.constant -3.000000e-01 : f32
    %cst_1 = arith.constant 3.000000e-01 : f32
    %1 = vector.broadcast %cst : f32 to vector<8x256xf32>
    %2 = arith.maximumf %1, %0 : vector<8x256xf32>
    %3 = vector.broadcast %cst_1 : f32 to vector<8x256xf32>
    %4 = arith.minimumf %3, %2 : vector<8x256xf32>
    %5 = arith.subf %0, %4 : vector<8x256xf32>
    %c0_2 = arith.constant 0 : index
    %c0_3 = arith.constant 0 : index
    %6 = vector.load %arg3[%c0_2, %c0_3] : memref<8x256xf32, #tpu.memory_space<vmem>>, vector<8x256xf32>
    tpu.vector_store %arg3[%c0_2, %c0_3], %5 {strides = array<i32>} : memref<8x256xf32, #tpu.memory_space<vmem>>, vector<8x256xf32>,
    return
  }
  func.func @transform_0(%arg0: i32, %arg1: i32) -> (i32, i32) {
    %c0_i32 = arith.constant 0 : i32
    return %arg0, %arg1 : i32, i32
  }
  func.func @transform_1(%arg0: i32, %arg1: i32) -> (i32, i32) {
    %c0_i32 = arith.constant 0 : i32
    return %arg0, %arg1 : i32, i32
  }
}

</mosaic_0001>

<bundles_post_ra>
// kernel: _soft_thresh_forward_impl.1
= control target key start
LH: loop header
LB: loop body
LE: loop exit
PB: predicated region body
PF: predicated region fallthrough
CT: control target
= control target key end

     0   :  { %s46_s0 = inlined_call_operand.vmem [shape: f32[8,256], index: 0, kind: input, shape index: {}]   ;;  %s47_s1 = inlined_call_operand.vmem [shape: f32[8,256], index: 1, kind: output, shape index: {}]  }
   0x1   :  { %v8_v0 = vld [vmem:[%s46_s0] sm:$0xff]  ;;  %v9_v1 = vld [vmem:[%s46_s0 + $0x8] sm:$0xff] }
   0x2   :  { %v22_v2 = vclamps-f32 %v8_v0, 0.3  ;;  %v23_v3 = vclamps-f32 %v9_v1, 0.3 }
   0x4   :  { %v14_v4 = vsub.f32 %v8_v0, %v22_v2  ;;  %v15_v5 = vsub.f32 %v9_v1, %v23_v3 }
   0x6   :  { %16 = vst [vmem:[%s47_s1] sm:$0xff] %v14_v4 }
   0x7   :  { %17 = vst [vmem:[%s47_s1 + $0x8] sm:$0xff] %v15_v5 }

</bundles_post_ra>
